<compile_context>
chip_gen: v7x
topology: tpu7x:2x2x1
jax: 0.10.0
libtpu: 0.0.40
codegen_flags: <defaults>
</compile_context>

<pallas_src>
import jax
import jax.numpy as jnp
from jax import lax
from jax.experimental import pallas as pl
from jax.experimental.pallas import tpu as pltpu


# ------------------------------ Pallas kernels ------------------------------ #

def _conv_kernel_plain(w_ref, t_ref, b_ref, o_ref):
    """y = relu(W @ taps + bias); BN scale already folded into W."""
    y = jnp.dot(w_ref[...], t_ref[...], preferred_element_type=jnp.float32)
    y = y + b_ref[...]
    o_ref[...] = jnp.maximum(y, 0.0).astype(o_ref.dtype)


def _conv_kernel_identity(w_ref, t_ref, b_ref, r_ref, o_ref):
    """y = relu(W @ taps + bias + residual)   (identity shortcut)."""
    y = jnp.dot(w_ref[...], t_ref[...], preferred_element_type=jnp.float32)
    y = y + b_ref[...] + r_ref[...].astype(jnp.float32)
    o_ref[...] = jnp.maximum(y, 0.0).astype(o_ref.dtype)


def _conv_kernel_shortcut(w_ref, t_ref, b_ref, wsc_ref, xs_ref, bsc_ref, o_ref):
    """y = relu(W @ taps + bias + Wsc @ xs + bias_sc)   (1x1 conv + BN shortcut)."""
    y = jnp.dot(w_ref[...], t_ref[...], preferred_element_type=jnp.float32)
    y = y + b_ref[...]
    sc = jnp.dot(wsc_ref[...], xs_ref[...], preferred_element_type=jnp.float32)
    y = y + sc + bsc_ref[...]
    o_ref[...] = jnp.maximum(y, 0.0).astype(o_ref.dtype)


# ------------------------------ kernel wrapper ------------------------------ #

def _round_up(x, m):
    return (x + m - 1) // m * m


def _pick_tile(m, max_tile=2048):
    """Largest lane tile keeping 1-4 grid steps (per-step overhead ~0.35us)."""
    if m <= max_tile:
        return m
    t = max_tile - max_tile % 128
    while t >= 128:
        if m % t == 0:
            return t
        t -= 128
    return m   # fallback: single step (block == full dim, always legal)


def conv_matmul_bn_act(w_t, taps_t, bias, *, residual_t=None, shortcut=None,
                       out_dtype=jnp.float32):
    """One pallas_call: (Cout,K)@(K,M) bf16 MXU matmul + f32 bias/residual/ReLU.

    Transposed layout: the M = N*Ho*Wo pixels sit on the 128-lane axis, so the
    output BlockSpec is lane-dense even for Cout < 128.
    """
    cout, k = w_t.shape
    k2, m = taps_t.shape
    assert k == k2, (k, k2)
    tm = _pick_tile(m)
    grid = (m // tm,)

    args = [w_t, taps_t, bias.reshape(cout, 1).astype(jnp.float32)]
    in_specs = [
        pl.BlockSpec((cout, k), lambda i: (0, 0)),
        pl.BlockSpec((k, tm), lambda i: (0, i)),
        pl.BlockSpec((cout, 1), lambda i: (0, 0)),
    ]
    if shortcut is not None:
        wsc_t, xs_t, bsc = shortcut
        csc = wsc_t.shape[1]
        args += [wsc_t, xs_t, bsc.reshape(cout, 1).astype(jnp.float32)]
        in_specs += [
            pl.BlockSpec((cout, csc), lambda i: (0, 0)),
            pl.BlockSpec((csc, tm), lambda i: (0, i)),
            pl.BlockSpec((cout, 1), lambda i: (0, 0)),
        ]
        kernel = _conv_kernel_shortcut
    elif residual_t is not None:
        args.append(residual_t)
        in_specs.append(pl.BlockSpec((cout, tm), lambda i: (0, i)))
        kernel = _conv_kernel_identity
    else:
        kernel = _conv_kernel_plain

    return pl.pallas_call(
        kernel,
        out_shape=jax.ShapeDtypeStruct((cout, m), out_dtype),
        grid=grid,
        in_specs=in_specs,
        out_specs=pl.BlockSpec((cout, tm), lambda i: (0, i)),
        compiler_params=pltpu.CompilerParams(dimension_semantics=("parallel",)),
    )(*args)


# --------------------------- trace-time data prep --------------------------- #

def im2col_3x3_t(x_cnhw, stride):
    """'same' 3x3 taps at `stride`, channel-major transposed layout.

    Input  (C, N, H, W); output (Kp, M) bf16 with K rows ordered (kh, kw, cin),
    M = N*Ho*Wo columns ordered (n, ho, wo); Kp = round_up(9*C, 8).
    """
    c, n, h, w = x_cnhw.shape
    assert h % stride == 0 and w % stride == 0, (h, w, stride)
    ho, wo = h // stride, w // stride
    xpad = jnp.pad(x_cnhw, ((0, 0), (0, 0), (1, 1), (1, 1)))
    rows = [xpad[:, :, kh:kh + h:stride, kw:kw + w:stride].reshape(c, n * ho * wo)
            for kh in range(3) for kw in range(3)]
    taps = jnp.concatenate(rows, axis=0)                     # (9*C, M)
    kp = _round_up(9 * c, 8)
    if kp != 9 * c:
        taps = jnp.pad(taps, ((0, kp - 9 * c), (0, 0)))
    return taps.astype(jnp.bfloat16)


def fold_bn(bn, conv_bias, eps=1e-5):
    """Eval-mode BN folded to a per-channel (scale, bias); conv bias absorbed."""
    scale = bn["gamma"] / jnp.sqrt(bn["var"] + eps)
    bias = bn["beta"] - bn["mean"] * scale + conv_bias * scale
    return scale, bias


def fold_conv3x3_weight(w_oihw, scale, kp):
    """(Cout,Cin,3,3) torch-layout weight -> bf16 (Cout, Kp) with BN scale folded.

    Column order (kh, kw, cin) matches im2col_3x3_t row order.
    """
    cout, cin = w_oihw.shape[0], w_oihw.shape[1]
    w_t = jnp.transpose(w_oihw, (0, 2, 3, 1)).reshape(cout, 9 * cin)
    w_t = w_t * scale[:, None]
    if kp != 9 * cin:
        w_t = jnp.pad(w_t, ((0, 0), (0, kp - 9 * cin)))
    return w_t.astype(jnp.bfloat16)


# --------------------------------- forward ---------------------------------- #

def basic_block_forward(params, x_nchw, *, stride):
    """BasicBlock forward (eval-mode BN).  NCHW in, NCHW out."""
    n, cin, h, w = x_nchw.shape
    planes = params["conv1_w"].shape[0]
    ho, wo = h // stride, w // stride
    m = n * ho * wo

    x_cnhw = jnp.transpose(x_nchw, (1, 0, 2, 3))              # channel-major once

    # conv1 + bn1 + relu  -> bf16 intermediate activation (halves HBM traffic)
    s1, b1 = fold_bn(params["bn1"], params["conv1_b"])
    taps1 = im2col_3x3_t(x_cnhw, stride)
    w1 = fold_conv3x3_weight(params["conv1_w"], s1, taps1.shape[0])
    o1_t = conv_matmul_bn_act(w1, taps1, b1, out_dtype=jnp.bfloat16)   # (planes, M)

    # conv2 + bn2 + shortcut + relu   (single fused pallas_call)
    s2, b2 = fold_bn(params["bn2"], params["conv2_b"])
    o1_cnhw = o1_t.reshape(planes, n, ho, wo)                 # already channel-major
    taps2 = im2col_3x3_t(o1_cnhw, 1)
    w2 = fold_conv3x3_weight(params["conv2_w"], s2, taps2.shape[0])

    if "sc_w" in params:                                      # 1x1 conv + BN shortcut
        ssc, bsc = fold_bn(params["sc_bn"], params["sc_b"])
        wsc = (params["sc_w"].reshape(planes, cin) * ssc[:, None]).astype(jnp.bfloat16)
        xs_t = (x_cnhw[:, :, ::stride, ::stride].reshape(cin, m)).astype(jnp.bfloat16)
        out_t = conv_matmul_bn_act(w2, taps2, b2, shortcut=(wsc, xs_t, bsc))
    else:                                                     # identity residual
        res_t = x_cnhw.reshape(cin, m).astype(jnp.bfloat16)
        out_t = conv_matmul_bn_act(w2, taps2, b2, residual_t=res_t)

    return jnp.transpose(out_t.reshape(planes, n, ho, wo), (1, 0, 2, 3))


# ----------------------------- params / reference --------------------------- #

def init_bn(key, c):
    k1, k2, k3, k4 = jax.random.split(key, 4)
    return dict(
        gamma=jax.random.uniform(k1, (c,), minval=0.5, maxval=1.5),
        beta=0.1 * jax.random.normal(k2, (c,)),
        mean=0.1 * jax.random.normal(k3, (c,)),
        var=jax.random.uniform(k4, (c,), minval=0.5, maxval=1.5),
    )


def init_basic_block(key, in_planes, planes, stride):
    k = jax.random.split(key, 8)
    p = dict(
        conv1_w=jax.random.normal(k[0], (planes, in_planes, 3, 3), jnp.float32)
                / jnp.sqrt(9.0 * in_planes),
        conv1_b=0.05 * jax.random.normal(k[1], (planes,), jnp.float32),
        bn1=init_bn(k[2], planes),
        conv2_w=jax.random.normal(k[3], (planes, planes, 3, 3), jnp.float32)
                / jnp.sqrt(9.0 * planes),
        conv2_b=0.05 * jax.random.normal(k[4], (planes,), jnp.float32),
        bn2=init_bn(k[5], planes),
    )
    if stride != 1 or in_planes != planes:
        p["sc_w"] = (jax.random.normal(k[6], (planes, in_planes, 1, 1), jnp.float32)
                     / jnp.sqrt(float(in_planes)))
        p["sc_b"] = 0.05 * jax.random.normal(k[7], (planes,), jnp.float32)
        p["sc_bn"] = init_bn(jax.random.fold_in(key, 99), planes)
    return p


def basic_block_reference(params, x, *, stride, eps=1e-5):
    """Pure-JAX (f32, lax.conv) reference matching the PyTorch module in eval mode."""
    def conv(x, w, b, s, pad):
        y = lax.conv_general_dilated(x, w, (s, s), (pad, pad),
                                     dimension_numbers=("NCHW", "OIHW", "NCHW"))
        return y + b[None, :, None, None]

    def bn(y, p):
        sc = p["gamma"] / jnp.sqrt(p["var"] + eps)
        return y * sc[None, :, None, None] + (p["beta"] - p["mean"] * sc)[None, :, None, None]

    o = jax.nn.relu(bn(conv(x, params["conv1_w"], params["conv1_b"], stride, (1, 1)),
                       params["bn1"]))
    o = bn(conv(o, params["conv2_w"], params["conv2_b"], 1, (1, 1)), params["bn2"])
    if "sc_w" in params:
        sc = bn(conv(x, params["sc_w"], params["sc_b"], stride, (0, 0)), params["sc_bn"])
    else:
        sc = x
    return jax.nn.relu(o + sc)


# ----------------------------------- main ------------------------------------ #

if __name__ == "__main__":
    key = jax.random.PRNGKey(0)
    kx, kb1, kb2 = jax.random.split(key, 3)

    n, h, w = 2, 16, 16
    in_planes = 16
    x = jax.random.normal(kx, (n, in_planes, h, w), jnp.float32)

    # Block 1: identity shortcut (stride=1, in_planes == planes).
    blk1 = init_basic_block(kb1, in_planes, in_planes, 1)
    # Block 2: downsampling 1x1-conv + BN shortcut (stride=2, channel doubling).
    blk2 = init_basic_block(kb2, in_planes, 2 * in_planes, 2)

    @jax.jit
    def fwd(p1, p2, x):
        y = basic_block_forward(p1, x, stride=1)
        y = basic_block_forward(p2, y, stride=2)
        return y

    out = jax.block_until_ready(fwd(blk1, blk2, x))
    assert out.shape == (n, 2 * in_planes, h // 2, w // 2), out.shape
    assert bool(jnp.all(jnp.isfinite(out)))

    ref = basic_block_reference(blk2, basic_block_reference(blk1, x, stride=1), stride=2)
    assert bool(jnp.allclose(out, ref, atol=0.1, rtol=0.05)), (
        "mismatch vs f32 reference: max abs err %f" % float(jnp.max(jnp.abs(out - ref))))

    print("KERNEL_OK")
</pallas_src>

<mosaic_0001>
module attributes {stable_mosaic.version = 11 : i64} {
  func.func @_conv_kernel_plain(%arg0: i32, %arg1: memref<16x144xbf16, #tpu.memory_space<vmem>>, %arg2: memref<144x512xbf16, #tpu.memory_space<vmem>>, %arg3: memref<16x1xf32, #tpu.memory_space<vmem>>, %arg4: memref<16x512xbf16, #tpu.memory_space<vmem>>) attributes {dimension_semantics = [#tpu.dimension_semantics<parallel>], iteration_bounds = array<i64: 1>, scalar_prefetch = 0 : i64, scratch_operands = 0 : i64, tpu.core_type = #tpu.core_type<tc>, window_params = [{pipeline_mode = #tpu.pipeline_mode<synchronous>, transform_indices = @transform_0, window_bounds = array<i64: 16, 144>}, {transform_indices = @transform_1, window_bounds = array<i64: 144, 512>}, {pipeline_mode = #tpu.pipeline_mode<synchronous>, transform_indices = @transform_2, window_bounds = array<i64: 16, 1>}, {transform_indices = @transform_3, window_bounds = array<i64: 16, 512>}]} {
    %c0 = arith.constant 0 : index
    %c0_0 = arith.constant 0 : index
    %0 = vector.load %arg1[%c0, %c0_0] : memref<16x144xbf16, #tpu.memory_space<vmem>>, vector<16x144xbf16>
    %c0_1 = arith.constant 0 : index
    %c0_2 = arith.constant 0 : index
    %1 = vector.load %arg2[%c0_1, %c0_2] : memref<144x512xbf16, #tpu.memory_space<vmem>>, vector<144x512xbf16>
    %cst = arith.constant dense<0.000000e+00> : vector<16x512xf32>
    %2 = tpu.matmul %0, %1, %cst {dimension_numbers = #tpu.dot_dimension_numbers<[1], [0], [0], [1], [0, 0, 1, 1], [], []>} : vector<16x144xbf16>, vector<144x512xbf16>, vector<16x512xf32> -> vector<16x512xf32>
    %c0_3 = arith.constant 0 : index
    %c0_4 = arith.constant 0 : index
    %3 = vector.load %arg3[%c0_3, %c0_4] : memref<16x1xf32, #tpu.memory_space<vmem>>, vector<16x1xf32>
    %4 = vector.broadcast %3 : vector<16x1xf32> to vector<16x512xf32>
    %5 = arith.addf %2, %4 : vector<16x512xf32>
    %cst_5 = arith.constant 0.000000e+00 : f32
    %6 = vector.broadcast %cst_5 : f32 to vector<16x512xf32>
    %7 = arith.maximumf %5, %6 : vector<16x512xf32>
    %8 = arith.truncf %7 : vector<16x512xf32> to vector<16x512xbf16>
    %c0_6 = arith.constant 0 : index
    %c0_7 = arith.constant 0 : index
    %9 = vector.load %arg4[%c0_6, %c0_7] : memref<16x512xbf16, #tpu.memory_space<vmem>>, vector<16x512xbf16>
    tpu.vector_store %arg4[%c0_6, %c0_7], %8 {strides = array<i32>} : memref<16x512xbf16, #tpu.memory_space<vmem>>, vector<16x512xbf16>,
    return
  }
  func.func @transform_0(%arg0: i32) -> (i32, i32) {
    %c0_i32 = arith.constant 0 : i32
    %c0_i32_0 = arith.constant 0 : i32
    %c0_i32_1 = arith.constant 0 : i32
    return %c0_i32, %c0_i32_0 : i32, i32
  }
  func.func @transform_1(%arg0: i32) -> (i32, i32) {
    %c0_i32 = arith.constant 0 : i32
    %c0_i32_0 = arith.constant 0 : i32
    return %c0_i32, %arg0 : i32, i32
  }
  func.func @transform_2(%arg0: i32) -> (i32, i32) {
    %c0_i32 = arith.constant 0 : i32
    %c0_i32_0 = arith.constant 0 : i32
    %c0_i32_1 = arith.constant 0 : i32
    return %c0_i32, %c0_i32_0 : i32, i32
  }
  func.func @transform_3(%arg0: i32) -> (i32, i32) {
    %c0_i32 = arith.constant 0 : i32
    %c0_i32_0 = arith.constant 0 : i32
    return %c0_i32, %arg0 : i32, i32
  }
}

module attributes {stable_mosaic.version = 11 : i64} {
  func.func @_conv_kernel_identity(%arg0: i32, %arg1: memref<16x144xbf16, #tpu.memory_space<vmem>>, %arg2: memref<144x512xbf16, #tpu.memory_space<vmem>>, %arg3: memref<16x1xf32, #tpu.memory_space<vmem>>, %arg4: memref<16x512xbf16, #tpu.memory_space<vmem>>, %arg5: memref<16x512xf32, #tpu.memory_space<vmem>>) attributes {dimension_semantics = [#tpu.dimension_semantics<parallel>], iteration_bounds = array<i64: 1>, scalar_prefetch = 0 : i64, scratch_operands = 0 : i64, tpu.core_type = #tpu.core_type<tc>, window_params = [{pipeline_mode = #tpu.pipeline_mode<synchronous>, transform_indices = @transform_0, window_bounds = array<i64: 16, 144>}, {transform_indices = @transform_1, window_bounds = array<i64: 144, 512>}, {pipeline_mode = #tpu.pipeline_mode<synchronous>, transform_indices = @transform_2, window_bounds = array<i64: 16, 1>}, {transform_indices = @transform_3, window_bounds = array<i64: 16, 512>}, {transform_indices = @transform_4, window_bounds = array<i64: 16, 512>}]} {
    %c0 = arith.constant 0 : index
    %c0_0 = arith.constant 0 : index
    %0 = vector.load %arg1[%c0, %c0_0] : memref<16x144xbf16, #tpu.memory_space<vmem>>, vector<16x144xbf16>
    %c0_1 = arith.constant 0 : index
    %c0_2 = arith.constant 0 : index
    %1 = vector.load %arg2[%c0_1, %c0_2] : memref<144x512xbf16, #tpu.memory_space<vmem>>, vector<144x512xbf16>
    %cst = arith.constant dense<0.000000e+00> : vector<16x512xf32>
    %2 = tpu.matmul %0, %1, %cst {dimension_numbers = #tpu.dot_dimension_numbers<[1], [0], [0], [1], [0, 0, 1, 1], [], []>} : vector<16x144xbf16>, vector<144x512xbf16>, vector<16x512xf32> -> vector<16x512xf32>
    %c0_3 = arith.constant 0 : index
    %c0_4 = arith.constant 0 : index
    %3 = vector.load %arg3[%c0_3, %c0_4] : memref<16x1xf32, #tpu.memory_space<vmem>>, vector<16x1xf32>
    %4 = vector.broadcast %3 : vector<16x1xf32> to vector<16x512xf32>
    %5 = arith.addf %2, %4 : vector<16x512xf32>
    %c0_5 = arith.constant 0 : index
    %c0_6 = arith.constant 0 : index
    %6 = vector.load %arg4[%c0_5, %c0_6] : memref<16x512xbf16, #tpu.memory_space<vmem>>, vector<16x512xbf16>
    %7 = arith.extf %6 : vector<16x512xbf16> to vector<16x512xf32>
    %8 = arith.addf %5, %7 : vector<16x512xf32>
    %cst_7 = arith.constant 0.000000e+00 : f32
    %9 = vector.broadcast %cst_7 : f32 to vector<16x512xf32>
    %10 = arith.maximumf %8, %9 : vector<16x512xf32>
    %c0_8 = arith.constant 0 : index
    %c0_9 = arith.constant 0 : index
    %11 = vector.load %arg5[%c0_8, %c0_9] : memref<16x512xf32, #tpu.memory_space<vmem>>, vector<16x512xf32>
    tpu.vector_store %arg5[%c0_8, %c0_9], %10 {strides = array<i32>} : memref<16x512xf32, #tpu.memory_space<vmem>>, vector<16x512xf32>,
    return
  }
  func.func @transform_0(%arg0: i32) -> (i32, i32) {
    %c0_i32 = arith.constant 0 : i32
    %c0_i32_0 = arith.constant 0 : i32
    %c0_i32_1 = arith.constant 0 : i32
    return %c0_i32, %c0_i32_0 : i32, i32
  }
  func.func @transform_1(%arg0: i32) -> (i32, i32) {
    %c0_i32 = arith.constant 0 : i32
    %c0_i32_0 = arith.constant 0 : i32
    return %c0_i32, %arg0 : i32, i32
  }
  func.func @transform_2(%arg0: i32) -> (i32, i32) {
    %c0_i32 = arith.constant 0 : i32
    %c0_i32_0 = arith.constant 0 : i32
    %c0_i32_1 = arith.constant 0 : i32
    return %c0_i32, %c0_i32_0 : i32, i32
  }
  func.func @transform_3(%arg0: i32) -> (i32, i32) {
    %c0_i32 = arith.constant 0 : i32
    %c0_i32_0 = arith.constant 0 : i32
    return %c0_i32, %arg0 : i32, i32
  }
  func.func @transform_4(%arg0: i32) -> (i32, i32) {
    %c0_i32 = arith.constant 0 : i32
    %c0_i32_0 = arith.constant 0 : i32
    return %c0_i32, %arg0 : i32, i32
  }
}

module attributes {stable_mosaic.version = 11 : i64} {
  func.func @_conv_kernel_plain(%arg0: i32, %arg1: memref<32x144xbf16, #tpu.memory_space<vmem>>, %arg2: memref<144x128xbf16, #tpu.memory_space<vmem>>, %arg3: memref<32x1xf32, #tpu.memory_space<vmem>>, %arg4: memref<32x128xbf16, #tpu.memory_space<vmem>>) attributes {dimension_semantics = [#tpu.dimension_semantics<parallel>], iteration_bounds = array<i64: 1>, scalar_prefetch = 0 : i64, scratch_operands = 0 : i64, tpu.core_type = #tpu.core_type<tc>, window_params = [{pipeline_mode = #tpu.pipeline_mode<synchronous>, transform_indices = @transform_0, window_bounds = array<i64: 32, 144>}, {transform_indices = @transform_1, window_bounds = array<i64: 144, 128>}, {pipeline_mode = #tpu.pipeline_mode<synchronous>, transform_indices = @transform_2, window_bounds = array<i64: 32, 1>}, {transform_indices = @transform_3, window_bounds = array<i64: 32, 128>}]} {
    %c0 = arith.constant 0 : index
    %c0_0 = arith.constant 0 : index
    %0 = vector.load %arg1[%c0, %c0_0] : memref<32x144xbf16, #tpu.memory_space<vmem>>, vector<32x144xbf16>
    %c0_1 = arith.constant 0 : index
    %c0_2 = arith.constant 0 : index
    %1 = vector.load %arg2[%c0_1, %c0_2] : memref<144x128xbf16, #tpu.memory_space<vmem>>, vector<144x128xbf16>
    %cst = arith.constant dense<0.000000e+00> : vector<32x128xf32>
    %2 = tpu.matmul %0, %1, %cst {dimension_numbers = #tpu.dot_dimension_numbers<[1], [0], [0], [1], [0, 0, 1, 1], [], []>} : vector<32x144xbf16>, vector<144x128xbf16>, vector<32x128xf32> -> vector<32x128xf32>
    %c0_3 = arith.constant 0 : index
    %c0_4 = arith.constant 0 : index
    %3 = vector.load %arg3[%c0_3, %c0_4] : memref<32x1xf32, #tpu.memory_space<vmem>>, vector<32x1xf32>
    %4 = vector.broadcast %3 : vector<32x1xf32> to vector<32x128xf32>
    %5 = arith.addf %2, %4 : vector<32x128xf32>
    %cst_5 = arith.constant 0.000000e+00 : f32
    %6 = vector.broadcast %cst_5 : f32 to vector<32x128xf32>
    %7 = arith.maximumf %5, %6 : vector<32x128xf32>
    %8 = arith.truncf %7 : vector<32x128xf32> to vector<32x128xbf16>
    %c0_6 = arith.constant 0 : index
    %c0_7 = arith.constant 0 : index
    %9 = vector.load %arg4[%c0_6, %c0_7] : memref<32x128xbf16, #tpu.memory_space<vmem>>, vector<32x128xbf16>
    tpu.vector_store %arg4[%c0_6, %c0_7], %8 {strides = array<i32>} : memref<32x128xbf16, #tpu.memory_space<vmem>>, vector<32x128xbf16>,
    return
  }
  func.func @transform_0(%arg0: i32) -> (i32, i32) {
    %c0_i32 = arith.constant 0 : i32
    %c0_i32_0 = arith.constant 0 : i32
    %c0_i32_1 = arith.constant 0 : i32
    return %c0_i32, %c0_i32_0 : i32, i32
  }
  func.func @transform_1(%arg0: i32) -> (i32, i32) {
    %c0_i32 = arith.constant 0 : i32
    %c0_i32_0 = arith.constant 0 : i32
    return %c0_i32, %arg0 : i32, i32
  }
  func.func @transform_2(%arg0: i32) -> (i32, i32) {
    %c0_i32 = arith.constant 0 : i32
    %c0_i32_0 = arith.constant 0 : i32
    %c0_i32_1 = arith.constant 0 : i32
    return %c0_i32, %c0_i32_0 : i32, i32
  }
  func.func @transform_3(%arg0: i32) -> (i32, i32) {
    %c0_i32 = arith.constant 0 : i32
    %c0_i32_0 = arith.constant 0 : i32
    return %c0_i32, %arg0 : i32, i32
  }
}

module attributes {stable_mosaic.version = 11 : i64} {
  func.func @_conv_kernel_shortcut(%arg0: i32, %arg1: memref<32x288xbf16, #tpu.memory_space<vmem>>, %arg2: memref<288x128xbf16, #tpu.memory_space<vmem>>, %arg3: memref<32x1xf32, #tpu.memory_space<vmem>>, %arg4: memref<32x16xbf16, #tpu.memory_space<vmem>>, %arg5: memref<16x128xbf16, #tpu.memory_space<vmem>>, %arg6: memref<32x1xf32, #tpu.memory_space<vmem>>, %arg7: memref<32x128xf32, #tpu.memory_space<vmem>>) attributes {dimension_semantics = [#tpu.dimension_semantics<parallel>], iteration_bounds = array<i64: 1>, scalar_prefetch = 0 : i64, scratch_operands = 0 : i64, tpu.core_type = #tpu.core_type<tc>, window_params = [{pipeline_mode = #tpu.pipeline_mode<synchronous>, transform_indices = @transform_0, window_bounds = array<i64: 32, 288>}, {transform_indices = @transform_1, window_bounds = array<i64: 288, 128>}, {pipeline_mode = #tpu.pipeline_mode<synchronous>, transform_indices = @transform_2, window_bounds = array<i64: 32, 1>}, {pipeline_mode = #tpu.pipeline_mode<synchronous>, transform_indices = @transform_3, window_bounds = array<i64: 32, 16>}, {transform_indices = @transform_4, window_bounds = array<i64: 16, 128>}, {pipeline_mode = #tpu.pipeline_mode<synchronous>, transform_indices = @transform_5, window_bounds = array<i64: 32, 1>}, {transform_indices = @transform_6, window_bounds = array<i64: 32, 128>}]} {
    %c0 = arith.constant 0 : index
    %c0_0 = arith.constant 0 : index
    %0 = vector.load %arg1[%c0, %c0_0] : memref<32x288xbf16, #tpu.memory_space<vmem>>, vector<32x288xbf16>
    %c0_1 = arith.constant 0 : index
    %c0_2 = arith.constant 0 : index
    %1 = vector.load %arg2[%c0_1, %c0_2] : memref<288x128xbf16, #tpu.memory_space<vmem>>, vector<288x128xbf16>
    %cst = arith.constant dense<0.000000e+00> : vector<32x128xf32>
    %2 = tpu.matmul %0, %1, %cst {dimension_numbers = #tpu.dot_dimension_numbers<[1], [0], [0], [1], [0, 0, 1, 1], [], []>} : vector<32x288xbf16>, vector<288x128xbf16>, vector<32x128xf32> -> vector<32x128xf32>
    %c0_3 = arith.constant 0 : index
    %c0_4 = arith.constant 0 : index
    %3 = vector.load %arg3[%c0_3, %c0_4] : memref<32x1xf32, #tpu.memory_space<vmem>>, vector<32x1xf32>
    %4 = vector.broadcast %3 : vector<32x1xf32> to vector<32x128xf32>
    %5 = arith.addf %2, %4 : vector<32x128xf32>
    %c0_5 = arith.constant 0 : index
    %c0_6 = arith.constant 0 : index
    %6 = vector.load %arg4[%c0_5, %c0_6] : memref<32x16xbf16, #tpu.memory_space<vmem>>, vector<32x16xbf16>
    %c0_7 = arith.constant 0 : index
    %c0_8 = arith.constant 0 : index
    %7 = vector.load %arg5[%c0_7, %c0_8] : memref<16x128xbf16, #tpu.memory_space<vmem>>, vector<16x128xbf16>
    %cst_9 = arith.constant dense<0.000000e+00> : vector<32x128xf32>
    %8 = tpu.matmul %6, %7, %cst_9 {dimension_numbers = #tpu.dot_dimension_numbers<[1], [0], [0], [1], [0, 0, 1, 1], [], []>} : vector<32x16xbf16>, vector<16x128xbf16>, vector<32x128xf32> -> vector<32x128xf32>
    %9 = arith.addf %5, %8 : vector<32x128xf32>
    %c0_10 = arith.constant 0 : index
    %c0_11 = arith.constant 0 : index
    %10 = vector.load %arg6[%c0_10, %c0_11] : memref<32x1xf32, #tpu.memory_space<vmem>>, vector<32x1xf32>
    %11 = vector.broadcast %10 : vector<32x1xf32> to vector<32x128xf32>
    %12 = arith.addf %9, %11 : vector<32x128xf32>
    %cst_12 = arith.constant 0.000000e+00 : f32
    %13 = vector.broadcast %cst_12 : f32 to vector<32x128xf32>
    %14 = arith.maximumf %12, %13 : vector<32x128xf32>
    %c0_13 = arith.constant 0 : index
    %c0_14 = arith.constant 0 : index
    %15 = vector.load %arg7[%c0_13, %c0_14] : memref<32x128xf32, #tpu.memory_space<vmem>>, vector<32x128xf32>
    tpu.vector_store %arg7[%c0_13, %c0_14], %14 {strides = array<i32>} : memref<32x128xf32, #tpu.memory_space<vmem>>, vector<32x128xf32>,
    return
  }
  func.func @transform_0(%arg0: i32) -> (i32, i32) {
    %c0_i32 = arith.constant 0 : i32
    %c0_i32_0 = arith.constant 0 : i32
    %c0_i32_1 = arith.constant 0 : i32
    return %c0_i32, %c0_i32_0 : i32, i32
  }
  func.func @transform_1(%arg0: i32) -> (i32, i32) {
    %c0_i32 = arith.constant 0 : i32
    %c0_i32_0 = arith.constant 0 : i32
    return %c0_i32, %arg0 : i32, i32
  }
  func.func @transform_2(%arg0: i32) -> (i32, i32) {
    %c0_i32 = arith.constant 0 : i32
    %c0_i32_0 = arith.constant 0 : i32
    %c0_i32_1 = arith.constant 0 : i32
    return %c0_i32, %c0_i32_0 : i32, i32
  }
  func.func @transform_3(%arg0: i32) -> (i32, i32) {
    %c0_i32 = arith.constant 0 : i32
    %c0_i32_0 = arith.constant 0 : i32
    %c0_i32_1 = arith.constant 0 : i32
    return %c0_i32, %c0_i32_0 : i32, i32
  }
  func.func @transform_4(%arg0: i32) -> (i32, i32) {
    %c0_i32 = arith.constant 0 : i32
    %c0_i32_0 = arith.constant 0 : i32
    return %c0_i32, %arg0 : i32, i32
  }
  func.func @transform_5(%arg0: i32) -> (i32, i32) {
    %c0_i32 = arith.constant 0 : i32
    %c0_i32_0 = arith.constant 0 : i32
    %c0_i32_1 = arith.constant 0 : i32
    return %c0_i32, %c0_i32_0 : i32, i32
  }
  func.func @transform_6(%arg0: i32) -> (i32, i32) {
    %c0_i32 = arith.constant 0 : i32
    %c0_i32_0 = arith.constant 0 : i32
    return %c0_i32, %arg0 : i32, i32
  }
}

</mosaic_0001>

<bundles_post_ra>
// kernel: fwd.4
= control target key start
LH: loop header
LB: loop body
LE: loop exit
PB: predicated region body
PF: predicated region fallthrough
CT: control target
= control target key end

     0   :  { %v491_v1 = vmov 0   ;;  %vm254_vm0 = vcmask 130048   ;;  %s644_s1 = inlined_call_operand.vmem [shape: bf16[144,512], index: 1, kind: input, shape index: {}]   ;;  %s645_s0 = inlined_call_operand.vmem [shape: bf16[16,144], index: 0, kind: input, shape index: {}]   ;;  %s646_s2 = inlined_call_operand.vmem [shape: f32[16,1], index: 2, kind: input, shape index: {}]   ;;  %s647_s3 = inlined_call_operand.vmem [shape: bf16[16,512], index: 3, kind: output, shape index: {}]  }
   0x1   :  { %v434_v0 = vld [vmem:[%s644_s1 + $0x4] ss:$16 sps:$4 sm:$0xff]   ;;  %433 = vset.pattern.permute.xlu0 %v491_v1  ;;  %v436_v2 = vld [vmem:[%s644_s1 + $0xc] ss:$16 sps:$4 sm:$0xff]   ;;  %v438_v3 = vld [vmem:[%s644_s1] ss:$16 sps:$4 sm:$0xff]  }
   0x2   :  { %258 = vmatprep.subr.bf16.mxu0 %v434_v0  ;;  %v439_v4 = vld [vmem:[%s644_s1 + $0x8] ss:$16 sps:$4 sm:$0xff]   ;;  %301 = vmatprep.subr.bf16.mxu1 %v436_v2  ;;  %v440_v5 = vld [vmem:[%s644_s1 + $0x24] ss:$16 sps:$4 sm:$0xff]   ;;  %v442_v6 = vld [vmem:[%s644_s1 + $0x2c] ss:$16 sps:$4 sm:$0xff]  }
   0x3   :  { %259 = vmatpush1.bf16.msra.mxu0 %v438_v3  ;;  %302 = vmatpush1.bf16.msra.mxu1 %v439_v4  ;;  %v444_v7 = vld [vmem:[%s644_s1 + $0x20] ss:$16 sps:$4 sm:$0xff]   ;;  %v445_v8 = vld [vmem:[%s644_s1 + $0x28] ss:$16 sps:$4 sm:$0xff]   ;;  %v446_v9 = vld [vmem:[%s644_s1 + $0x44] ss:$16 sps:$4 sm:$0xff]  }
   0x4   :  { %260 = vmatprep.subr.bf16.mxu0 %v440_v5  ;;  %303 = vmatprep.subr.bf16.mxu1 %v442_v6  ;;  %v448_v10 = vld [vmem:[%s644_s1 + $0x4c] ss:$16 sps:$4 sm:$0xff]   ;;  %v450_v11 = vld [vmem:[%s644_s1 + $0x40] ss:$16 sps:$4 sm:$0xff]   ;;  %v451_v12 = vld [vmem:[%s644_s1 + $0x48] ss:$16 sps:$4 sm:$0xff]  }
   0x5   :  { %v452_v13 = vld [vmem:[%s644_s1 + $0x64] ss:$16 sps:$4 sm:$0xff]   ;;  %v454_v14 = vld [vmem:[%s644_s1 + $0x6c] ss:$16 sps:$4 sm:$0xff]   ;;  %v456_v15 = vld [vmem:[%s644_s1 + $0x60] ss:$16 sps:$4 sm:$0xff]  }
   0x6   :  { %v457_v16 = vld [vmem:[%s644_s1 + $0x68] ss:$16 sps:$4 sm:$0xff]   ;;  %v458_v17 = vld [vmem:[%s644_s1 + $0x84] ss:$16 sps:$4 sm:$0xff]   ;;  %v460_v18 = vld [vmem:[%s644_s1 + $0x8c] ss:$16 sps:$4 sm:$0xff]  }
   0x7   :  { %261 = vmatpush1.bf16.msra.mxu0 %v444_v7  ;;  %304 = vmatpush1.bf16.msra.mxu1 %v445_v8  ;;  %v462_v19 = vld [vmem:[%s644_s1 + $0x80] ss:$16 sps:$4 sm:$0xff]   ;;  %v463_v20 = vld [vmem:[%s644_s1 + $0x88] ss:$16 sps:$4 sm:$0xff]   ;;  %v464_v21 = vld [vmem:[%s644_s1 + $0xa4] ss:$16 sps:$4 sm:$0xff]  }
   0x8   :  { %262 = vmatprep.subr.bf16.mxu0 %v446_v9  ;;  %305 = vmatprep.subr.bf16.mxu1 %v448_v10  ;;  %v466_v22 = vld [vmem:[%s644_s1 + $0xac] ss:$16 sps:$4 sm:$0xff]   ;;  %v468_v23 = vld [vmem:[%s644_s1 + $0xa0] ss:$16 sps:$4 sm:$0xff]   ;;  %v469_v24 = vld [vmem:[%s644_s1 + $0xa8] ss:$16 sps:$4 sm:$0xff]  }
   0x9   :  { %v470_v25 = vld [vmem:[%s644_s1 + $0xc4] ss:$16 sps:$4 sm:$0xff]   ;;  %v472_v26 = vld [vmem:[%s644_s1 + $0xcc] ss:$16 sps:$4 sm:$0xff]   ;;  %v474_v27 = vld [vmem:[%s644_s1 + $0xc0] ss:$16 sps:$4 sm:$0xff]  }
   0xa   :  { %v475_v28 = vld [vmem:[%s644_s1 + $0xc8] ss:$16 sps:$4 sm:$0xff]   ;;  %v476_v29 = vld [vmem:[%s644_s1 + $0xe4] ss:$16 sps:$4 sm:$0xff]   ;;  %v478_v30 = vld [vmem:[%s644_s1 + $0xec] ss:$16 sps:$4 sm:$0xff]  }
   0xb   :  { %263 = vmatpush1.bf16.msra.mxu0 %v450_v11  ;;  %306 = vmatpush1.bf16.msra.mxu1 %v451_v12  ;;  %v490_v31 = vld [vmem:[%s645_s0 + $0x4] ss:$8 sps:$4 sm:$0xff]   ;;  %v480_v34 = vld [vmem:[%s644_s1 + $0xe0] ss:$16 sps:$4 sm:$0xff]   ;;  %v481_v35 = vld [vmem:[%s644_s1 + $0xe8] ss:$16 sps:$4 sm:$0xff]  }
   0xc   :  { %264 = vmatprep.subr.bf16.mxu0 %v452_v13  ;;  %307 = vmatprep.subr.bf16.mxu1 %v454_v14  ;;  %v53_v32 = vld [vmem:[%s646_s2] sm:$0xff]  ;;  %v54_v33 = vld [vmem:[%s646_s2 + $0x8] sm:$0xff] }
   0xd   :  { %57 = vperm.xlu0 %433, %v53_v32   ;;  %422 = vmatprep.mubr.msk.bf16.mxu0 %vm254_vm0, %v490_v31  ;;  %v482_v36 = vld [vmem:[%s644_s1 + $0x104] ss:$16 sps:$4 sm:$0xff]   ;;  %v484_v37 = vld [vmem:[%s644_s1 + $0x10c] ss:$16 sps:$4 sm:$0xff]   ;;  %v486_v38 = vld [vmem:[%s644_s1 + $0x100] ss:$16 sps:$4 sm:$0xff]  }
   0xe   :  { %423 = vmatprep.mubr.msk.bf16.mxu1 %vm254_vm0, %v490_v31  ;;  %v487_v39 = vld [vmem:[%s644_s1 + $0x108] ss:$16 sps:$4 sm:$0xff]  }
   0xf   :  { %265 = vmatpush1.bf16.msra.mxu0 %v456_v15  ;;  %308 = vmatpush1.bf16.msra.mxu1 %v457_v16  ;;  %v488_v40 = vld [vmem:[%s645_s0] ss:$8 sps:$4 sm:$0xff]  }
  0x10   :  { %266 = vmatprep.subr.bf16.mxu0 %v458_v17  ;;  %309 = vmatprep.subr.bf16.mxu1 %v460_v18 }
  0x11   :  { %62 = vperm.xlu0 %433, %v54_v33  }
  0x13   :  { %267 = vmatpush1.bf16.msra.mxu0 %v462_v19  ;;  %310 = vmatpush1.bf16.msra.mxu1 %v463_v20 }
  0x14   :  { %268 = vmatprep.subr.bf16.mxu0 %v464_v21  ;;  %311 = vmatprep.subr.bf16.mxu1 %v466_v22 }
  0x17   :  { %269 = vmatpush1.bf16.msra.mxu0 %v468_v23  ;;  %312 = vmatpush1.bf16.msra.mxu1 %v469_v24 }
  0x18   :  { %270 = vmatprep.subr.bf16.mxu0 %v470_v25  ;;  %313 = vmatprep.subr.bf16.mxu1 %v472_v26 }
  0x1b   :  { %271 = vmatpush1.bf16.msra.mxu0 %v474_v27  ;;  %314 = vmatpush1.bf16.msra.mxu1 %v475_v28 }
  0x1c   :  { %272 = vmatprep.subr.bf16.mxu0 %v476_v29  ;;  %315 = vmatprep.subr.bf16.mxu1 %v478_v30 }
  0x1f   :  { %273 = vmatpush1.bf16.msra.mxu0 %v480_v34  ;;  %316 = vmatpush1.bf16.msra.mxu1 %v481_v35 }
  0x20   :  { %274 = vmatprep.subr.bf16.mxu0 %v482_v36  ;;  %317 = vmatprep.subr.bf16.mxu1 %v484_v37 }
  0x23   :  { %275 = vmatpush1.bf16.msra.mxu0 %v486_v38  ;;  %318 = vmatpush1.bf16.msra.mxu1 %v487_v39 }
  0x26   :  { %291 = vmatmul.mubr.bf16.vlgmr.msra.gmra.mrb[0].mxu0 %v488_v40  ;;  %334 = vmatmul.mubr.bf16.vlgmr.msra.gmra.mrb[0].mxu1 %v488_v40 }
  0x8c   :  { %v58_v41 = vpop.permute.xlu0 %57 }
  0x90   :  { %v63_v42 = vpop.permute.xlu0 %62 }
  0xf9   :  { %v292_v43 = vpop.f32.mrb[0].mxu0  ;;  %v335_v44 = vpop.f32.mrb[0].mxu1 }
  0xfa   :  { %v293_v45 = vadd.f32 %v292_v43, %v58_v41  ;;  %v336_v46 = vadd.f32 %v335_v44, %v58_v41  ;;  %v294_v47 = vpop.f32.mrb[1].mxu0  ;;  %v337_v48 = vpop.f32.mrb[1].mxu1 }
  0xfb   :  { %v295_v49 = vadd.f32 %v294_v47, %v58_v41  ;;  %v338_v50 = vadd.f32 %v337_v48, %v58_v41  ;;  %v296_v51 = vpop.f32.mrb[2].mxu0  ;;  %v339_v52 = vpop.f32.mrb[2].mxu1 }
  0xfc   :  { %v344_v53 = vmax.f32 %v293_v45, 0.0  ;;  %v346_v54 = vmax.f32 %v336_v46, 0.0  ;;  %v297_v55 = vadd.f32 %v296_v51, %v63_v42  ;;  %v340_v56 = vadd.f32 %v339_v52, %v63_v42  ;;  %v298_v57 = vpop.f32.mrb[3].mxu0  ;;  %v341_v58 = vpop.f32.mrb[3].mxu1 }
  0xfd   :  { %v345_v59 = vmax.f32 %v295_v49, 0.0  ;;  %v347_v60 = vmax.f32 %v338_v50, 0.0  ;;  %v299_v61 = vadd.f32 %v298_v57, %v63_v42  ;;  %v342_v62 = vadd.f32 %v341_v58, %v63_v42 }
  0xfe   :  { %v348_v63 = vmax.f32 %v297_v55, 0.0  ;;  %v350_v0 = vmax.f32 %v340_v56, 0.0 }
  0xff   :  { %v428_v1 = vpack.c.bf16 %v345_v59, %v344_v53  ;;  %v429_v2 = vpack.c.bf16 %v347_v60, %v346_v54  ;;  %v349_v3 = vmax.f32 %v299_v61, 0.0  ;;  %v351_v4 = vmax.f32 %v342_v62, 0.0 }
 0x101   :  { %376 = vst [vmem:[%s647_s3] sm:$0xff] %v428_v1  ;;  %377 = vst [vmem:[%s647_s3 + $0x8] sm:$0xff] %v429_v2  ;;  %v430_v5 = vpack.c.bf16 %v349_v3, %v348_v63  ;;  %v431_v6 = vpack.c.bf16 %v351_v4, %v350_v0 }
 0x103   :  { %378 = vst [vmem:[%s647_s3 + $0x10] sm:$0xff] %v430_v5  ;;  %379 = vst [vmem:[%s647_s3 + $0x18] sm:$0xff] %v431_v6 }

// kernel: fwd.5
= control target key start
LH: loop header
LB: loop body
LE: loop exit
PB: predicated region body
PF: predicated region fallthrough
CT: control target
= control target key end

     0   :  { %v486_v1 = vmov 0   ;;  %vm257_vm0 = vcmask 130048   ;;  %s668_s1 = inlined_call_operand.vmem [shape: bf16[144,512], index: 1, kind: input, shape index: {}]   ;;  %s669_s0 = inlined_call_operand.vmem [shape: bf16[16,144], index: 0, kind: input, shape index: {}]   ;;  %s670_s2 = inlined_call_operand.vmem [shape: f32[16,1], index: 2, kind: input, shape index: {}]   ;;  %s671_s3 = inlined_call_operand.vmem [shape: bf16[16,512], index: 3, kind: input, shape index: {}]   ;;  %s672_s4 = inlined_call_operand.vmem [shape: f32[16,512], index: 4, kind: output, shape index: {}]  }
   0x1   :  { %v429_v0 = vld [vmem:[%s668_s1 + $0x4] ss:$16 sps:$4 sm:$0xff]   ;;  %428 = vset.pattern.permute.xlu0 %v486_v1  ;;  %v431_v2 = vld [vmem:[%s668_s1 + $0xc] ss:$16 sps:$4 sm:$0xff]   ;;  %v433_v3 = vld [vmem:[%s668_s1] ss:$16 sps:$4 sm:$0xff]  }
   0x2   :  { %261 = vmatprep.subr.bf16.mxu0 %v429_v0  ;;  %v434_v4 = vld [vmem:[%s668_s1 + $0x8] ss:$16 sps:$4 sm:$0xff]   ;;  %304 = vmatprep.subr.bf16.mxu1 %v431_v2  ;;  %v435_v5 = vld [vmem:[%s668_s1 + $0x24] ss:$16 sps:$4 sm:$0xff]   ;;  %v437_v6 = vld [vmem:[%s668_s1 + $0x2c] ss:$16 sps:$4 sm:$0xff]  }
   0x3   :  { %262 = vmatpush1.bf16.msra.mxu0 %v433_v3  ;;  %305 = vmatpush1.bf16.msra.mxu1 %v434_v4  ;;  %v439_v7 = vld [vmem:[%s668_s1 + $0x20] ss:$16 sps:$4 sm:$0xff]   ;;  %v440_v8 = vld [vmem:[%s668_s1 + $0x28] ss:$16 sps:$4 sm:$0xff]   ;;  %v441_v9 = vld [vmem:[%s668_s1 + $0x44] ss:$16 sps:$4 sm:$0xff]  }
   0x4   :  { %263 = vmatprep.subr.bf16.mxu0 %v435_v5  ;;  %306 = vmatprep.subr.bf16.mxu1 %v437_v6  ;;  %v443_v10 = vld [vmem:[%s668_s1 + $0x4c] ss:$16 sps:$4 sm:$0xff]   ;;  %v445_v11 = vld [vmem:[%s668_s1 + $0x40] ss:$16 sps:$4 sm:$0xff]   ;;  %v446_v12 = vld [vmem:[%s668_s1 + $0x48] ss:$16 sps:$4 sm:$0xff]  }
   0x5   :  { %v447_v13 = vld [vmem:[%s668_s1 + $0x64] ss:$16 sps:$4 sm:$0xff]   ;;  %v449_v14 = vld [vmem:[%s668_s1 + $0x6c] ss:$16 sps:$4 sm:$0xff]   ;;  %v451_v15 = vld [vmem:[%s668_s1 + $0x60] ss:$16 sps:$4 sm:$0xff]  }
   0x6   :  { %v452_v16 = vld [vmem:[%s668_s1 + $0x68] ss:$16 sps:$4 sm:$0xff]   ;;  %v453_v17 = vld [vmem:[%s668_s1 + $0x84] ss:$16 sps:$4 sm:$0xff]   ;;  %v455_v18 = vld [vmem:[%s668_s1 + $0x8c] ss:$16 sps:$4 sm:$0xff]  }
   0x7   :  { %264 = vmatpush1.bf16.msra.mxu0 %v439_v7  ;;  %307 = vmatpush1.bf16.msra.mxu1 %v440_v8  ;;  %v457_v19 = vld [vmem:[%s668_s1 + $0x80] ss:$16 sps:$4 sm:$0xff]   ;;  %v458_v20 = vld [vmem:[%s668_s1 + $0x88] ss:$16 sps:$4 sm:$0xff]   ;;  %v459_v21 = vld [vmem:[%s668_s1 + $0xa4] ss:$16 sps:$4 sm:$0xff]  }
   0x8   :  { %265 = vmatprep.subr.bf16.mxu0 %v441_v9  ;;  %308 = vmatprep.subr.bf16.mxu1 %v443_v10  ;;  %v461_v22 = vld [vmem:[%s668_s1 + $0xac] ss:$16 sps:$4 sm:$0xff]   ;;  %v463_v23 = vld [vmem:[%s668_s1 + $0xa0] ss:$16 sps:$4 sm:$0xff]   ;;  %v464_v24 = vld [vmem:[%s668_s1 + $0xa8] ss:$16 sps:$4 sm:$0xff]  }
   0x9   :  { %v465_v25 = vld [vmem:[%s668_s1 + $0xc4] ss:$16 sps:$4 sm:$0xff]   ;;  %v467_v26 = vld [vmem:[%s668_s1 + $0xcc] ss:$16 sps:$4 sm:$0xff]   ;;  %v469_v27 = vld [vmem:[%s668_s1 + $0xc0] ss:$16 sps:$4 sm:$0xff]  }
   0xa   :  { %v470_v28 = vld [vmem:[%s668_s1 + $0xc8] ss:$16 sps:$4 sm:$0xff]   ;;  %v471_v29 = vld [vmem:[%s668_s1 + $0xe4] ss:$16 sps:$4 sm:$0xff]   ;;  %v473_v30 = vld [vmem:[%s668_s1 + $0xec] ss:$16 sps:$4 sm:$0xff]  }
   0xb   :  { %266 = vmatpush1.bf16.msra.mxu0 %v445_v11  ;;  %309 = vmatpush1.bf16.msra.mxu1 %v446_v12  ;;  %v485_v31 = vld [vmem:[%s669_s0 + $0x4] ss:$8 sps:$4 sm:$0xff]   ;;  %v475_v34 = vld [vmem:[%s668_s1 + $0xe0] ss:$16 sps:$4 sm:$0xff]   ;;  %v476_v35 = vld [vmem:[%s668_s1 + $0xe8] ss:$16 sps:$4 sm:$0xff]  }
   0xc   :  { %267 = vmatprep.subr.bf16.mxu0 %v447_v13  ;;  %310 = vmatprep.subr.bf16.mxu1 %v449_v14  ;;  %v56_v32 = vld [vmem:[%s670_s2] sm:$0xff]  ;;  %v57_v33 = vld [vmem:[%s670_s2 + $0x8] sm:$0xff]  ;;  %v349_v44 = vld [vmem:[%s671_s3 + $0x10] sm:$0xff] }
   0xd   :  { %60 = vperm.xlu0 %428, %v56_v32   ;;  %425 = vmatprep.mubr.msk.bf16.mxu0 %vm257_vm0, %v485_v31  ;;  %v477_v36 = vld [vmem:[%s668_s1 + $0x104] ss:$16 sps:$4 sm:$0xff]   ;;  %v479_v37 = vld [vmem:[%s668_s1 + $0x10c] ss:$16 sps:$4 sm:$0xff]   ;;  %v481_v38 = vld [vmem:[%s668_s1 + $0x100] ss:$16 sps:$4 sm:$0xff]   ;;  %v355_v57 = vunpack.c.l.bf16 %v349_v44  ;;  %v356_v63 = vunpack.c.h.bf16 %v349_v44 }
   0xe   :  { %426 = vmatprep.mubr.msk.bf16.mxu1 %vm257_vm0, %v485_v31  ;;  %v482_v39 = vld [vmem:[%s668_s1 + $0x108] ss:$16 sps:$4 sm:$0xff]   ;;  %v347_v42 = vld [vmem:[%s671_s3] sm:$0xff] }
   0xf   :  { %268 = vmatpush1.bf16.msra.mxu0 %v451_v15  ;;  %311 = vmatpush1.bf16.msra.mxu1 %v452_v16  ;;  %v483_v40 = vld [vmem:[%s669_s0] ss:$8 sps:$4 sm:$0xff]   ;;  %v350_v45 = vld [vmem:[%s671_s3 + $0x18] sm:$0xff]  ;;  %v351_v47 = vunpack.c.l.bf16 %v347_v42  ;;  %v352_v51 = vunpack.c.h.bf16 %v347_v42 }
  0x10   :  { %269 = vmatprep.subr.bf16.mxu0 %v453_v17  ;;  %312 = vmatprep.subr.bf16.mxu1 %v455_v18  ;;  %v348_v43 = vld [vmem:[%s671_s3 + $0x8] sm:$0xff]  ;;  %v357_v58 = vunpack.c.l.bf16 %v350_v45  ;;  %v358_v0 = vunpack.c.h.bf16 %v350_v45 }
  0x11   :  { %65 = vperm.xlu0 %428, %v57_v33   ;;  %v353_v48 = vunpack.c.l.bf16 %v348_v43  ;;  %v354_v52 = vunpack.c.h.bf16 %v348_v43 }
  0x13   :  { %270 = vmatpush1.bf16.msra.mxu0 %v457_v19  ;;  %313 = vmatpush1.bf16.msra.mxu1 %v458_v20 }
  0x14   :  { %271 = vmatprep.subr.bf16.mxu0 %v459_v21  ;;  %314 = vmatprep.subr.bf16.mxu1 %v461_v22 }
  0x17   :  { %272 = vmatpush1.bf16.msra.mxu0 %v463_v23  ;;  %315 = vmatpush1.bf16.msra.mxu1 %v464_v24 }
  0x18   :  { %273 = vmatprep.subr.bf16.mxu0 %v465_v25  ;;  %316 = vmatprep.subr.bf16.mxu1 %v467_v26 }
  0x1b   :  { %274 = vmatpush1.bf16.msra.mxu0 %v469_v27  ;;  %317 = vmatpush1.bf16.msra.mxu1 %v470_v28 }
  0x1c   :  { %275 = vmatprep.subr.bf16.mxu0 %v471_v29  ;;  %318 = vmatprep.subr.bf16.mxu1 %v473_v30 }
  0x1f   :  { %276 = vmatpush1.bf16.msra.mxu0 %v475_v34  ;;  %319 = vmatpush1.bf16.msra.mxu1 %v476_v35 }
  0x20   :  { %277 = vmatprep.subr.bf16.mxu0 %v477_v36  ;;  %320 = vmatprep.subr.bf16.mxu1 %v479_v37 }
  0x23   :  { %278 = vmatpush1.bf16.msra.mxu0 %v481_v38  ;;  %321 = vmatpush1.bf16.msra.mxu1 %v482_v39 }
  0x26   :  { %294 = vmatmul.mubr.bf16.vlgmr.msra.gmra.mrb[0].mxu0 %v483_v40  ;;  %337 = vmatmul.mubr.bf16.vlgmr.msra.gmra.mrb[0].mxu1 %v483_v40 }
  0x8c   :  { %v61_v41 = vpop.permute.xlu0 %60 }
  0x90   :  { %v66_v46 = vpop.permute.xlu0 %65 }
  0xf9   :  { %v295_v49 = vpop.f32.mrb[0].mxu0  ;;  %v338_v50 = vpop.f32.mrb[0].mxu1 }
  0xfa   :  { %v296_v53 = vadd.f32 %v295_v49, %v61_v41  ;;  %v339_v54 = vadd.f32 %v338_v50, %v61_v41  ;;  %v297_v55 = vpop.f32.mrb[1].mxu0  ;;  %v340_v56 = vpop.f32.mrb[1].mxu1 }
  0xfb   :  { %v298_v59 = vadd.f32 %v297_v55, %v61_v41  ;;  %v341_v60 = vadd.f32 %v340_v56, %v61_v41  ;;  %v299_v61 = vpop.f32.mrb[2].mxu0  ;;  %v342_v62 = vpop.f32.mrb[2].mxu1 }
  0xfc   :  { %v359_v1 = vadd.f32 %v351_v47, %v296_v53  ;;  %v361_v2 = vadd.f32 %v353_v48, %v339_v54  ;;  %v300_v3 = vadd.f32 %v299_v61, %v66_v46  ;;  %v343_v4 = vadd.f32 %v342_v62, %v66_v46  ;;  %v301_v5 = vpop.f32.mrb[3].mxu0  ;;  %v344_v6 = vpop.f32.mrb[3].mxu1 }
  0xfd   :  { %v360_v7 = vadd.f32 %v352_v51, %v298_v59  ;;  %v362_v8 = vadd.f32 %v354_v52, %v341_v60  ;;  %v302_v9 = vadd.f32 %v301_v5, %v66_v46  ;;  %v345_v10 = vadd.f32 %v344_v6, %v66_v46 }
  0xfe   :  { %v367_v11 = vmax.f32 %v359_v1, 0.0  ;;  %v369_v12 = vmax.f32 %v361_v2, 0.0  ;;  %v363_v13 = vadd.f32 %v355_v57, %v300_v3  ;;  %v365_v14 = vadd.f32 %v357_v58, %v343_v4 }
  0xff   :  { %v368_v15 = vmax.f32 %v360_v7, 0.0  ;;  %v370_v16 = vmax.f32 %v362_v8, 0.0  ;;  %v364_v17 = vadd.f32 %v356_v63, %v302_v9  ;;  %v366_v18 = vadd.f32 %v358_v0, %v345_v10 }
 0x100   :  { %375 = vst [vmem:[%s672_s4] sm:$0xff] %v367_v11  ;;  %377 = vst [vmem:[%s672_s4 + $0x10] sm:$0xff] %v369_v12  ;;  %v371_v19 = vmax.f32 %v363_v13, 0.0  ;;  %v373_v20 = vmax.f32 %v365_v14, 0.0 }
 0x101   :  { %376 = vst [vmem:[%s672_s4 + $0x8] sm:$0xff] %v368_v15  ;;  %378 = vst [vmem:[%s672_s4 + $0x18] sm:$0xff] %v370_v16  ;;  %v372_v21 = vmax.f32 %v364_v17, 0.0  ;;  %v374_v22 = vmax.f32 %v366_v18, 0.0 }
 0x102   :  { %379 = vst [vmem:[%s672_s4 + $0x20] sm:$0xff] %v371_v19  ;;  %381 = vst [vmem:[%s672_s4 + $0x30] sm:$0xff] %v373_v20 }
 0x103   :  { %380 = vst [vmem:[%s672_s4 + $0x28] sm:$0xff] %v372_v21  ;;  %382 = vst [vmem:[%s672_s4 + $0x38] sm:$0xff] %v374_v22 }

// kernel: fwd.6
= control target key start
LH: loop header
LB: loop body
LE: loop exit
PB: predicated region body
PF: predicated region fallthrough
CT: control target
= control target key end

     0   :  { %v287_v0 = vmov 0   ;;  %vm133_vm0 = vcmask 130048   ;;  %s365_s1 = inlined_call_operand.vmem [shape: bf16[144,128], index: 1, kind: input, shape index: {}]   ;;  %s366_s0 = inlined_call_operand.vmem [shape: bf16[32,144], index: 0, kind: input, shape index: {}]   ;;  %s367_s2 = inlined_call_operand.vmem [shape: f32[32,1], index: 2, kind: input, shape index: {}]   ;;  %s368_s3 = inlined_call_operand.vmem [shape: bf16[32,128], index: 3, kind: output, shape index: {}]  }
   0x1   :  { %140 = vmatprep.subr.bf16.mxu0 %v287_v0  ;;  %251 = vmatprep.subr.bf16.mxu1 %v287_v0  ;;  %v272_v1 = vld [vmem:[%s365_s1] sm:$0xff]   ;;  %v273_v2 = vld [vmem:[%s365_s1 + $0x8] sm:$0xff]   ;;  %v274_v3 = vld [vmem:[%s365_s1 + $0x10] sm:$0xff]  }
   0x2   :  { %271 = vset.pattern.permute.xlu1 %v287_v0  ;;  %270 = vset.pattern.permute.xlu0 %v287_v0  ;;  %v275_v4 = vld [vmem:[%s365_s1 + $0x18] sm:$0xff]   ;;  %v283_v5 = vld [vmem:[%s366_s0 + $0x4] ss:$8 sps:$4 sm:$0xff]   ;;  %v39_v7 = vld [vmem:[%s367_s2 + $0x10] sm:$0xff] }
   0x3   :  { %141 = vmatpush1.bf16.msra.mxu0 %v272_v1  ;;  %260 = vmatpush1.bf16.msra.mxu1 %v272_v1  ;;  %v286_v6 = vld [vmem:[%s366_s0 + $0x14] ss:$8 sps:$4 sm:$0xff]   ;;  %v37_v8 = vld [vmem:[%s367_s2] sm:$0xff]  ;;  %v38_v11 = vld [vmem:[%s367_s2 + $0x8] sm:$0xff] }
   0x4   :  { %142 = vmatprep.subr.bf16.mxu0 %v287_v0  ;;  %252 = vmatprep.subr.bf16.mxu1 %v287_v0  ;;  %v40_v9 = vld [vmem:[%s367_s2 + $0x18] sm:$0xff]  ;;  %v276_v10 = vld [vmem:[%s365_s1 + $0x20] sm:$0xff]   ;;  %v277_v12 = vld [vmem:[%s365_s1 + $0x28] sm:$0xff]  }
   0x5   :  { %230 = vmatprep.mubr.msk.bf16.mxu0 %vm133_vm0, %v283_v5  ;;  %53 = vperm.xlu1 %271, %v39_v7   ;;  %v278_v13 = vld [vmem:[%s365_s1 + $0x30] sm:$0xff]   ;;  %v279_v14 = vld [vmem:[%s365_s1 + $0x38] sm:$0xff]   ;;  %v280_v15 = vld [vmem:[%s365_s1 + $0x40] sm:$0xff]  }
   0x6   :  { %231 = vmatprep.mubr.msk.bf16.mxu1 %vm133_vm0, %v286_v6  ;;  %43 = vperm.xlu0 %270, %v37_v8   ;;  %v281_v16 = vld [vmem:[%s366_s0] ss:$8 sps:$4 sm:$0xff]   ;;  %v284_v17 = vld [vmem:[%s366_s0 + $0x10] ss:$8 sps:$4 sm:$0xff]  }
   0x7   :  { %143 = vmatpush1.bf16.msra.mxu0 %v273_v2  ;;  %261 = vmatpush1.bf16.msra.mxu1 %v273_v2 }
   0x8   :  { %144 = vmatprep.subr.bf16.mxu0 %v287_v0  ;;  %253 = vmatprep.subr.bf16.mxu1 %v287_v0 }
   0x9   :  { %58 = vperm.xlu1 %271, %v40_v9  }
   0xa   :  { %48 = vperm.xlu0 %270, %v38_v11  }
   0xb   :  { %145 = vmatpush1.bf16.msra.mxu0 %v274_v3  ;;  %262 = vmatpush1.bf16.msra.mxu1 %v274_v3 }
   0xc   :  { %146 = vmatprep.subr.bf16.mxu0 %v287_v0  ;;  %254 = vmatprep.subr.bf16.mxu1 %v287_v0 }
   0xf   :  { %147 = vmatpush1.bf16.msra.mxu0 %v275_v4  ;;  %263 = vmatpush1.bf16.msra.mxu1 %v275_v4 }
  0x10   :  { %148 = vmatprep.subr.bf16.mxu0 %v287_v0  ;;  %255 = vmatprep.subr.bf16.mxu1 %v287_v0 }
  0x13   :  { %149 = vmatpush1.bf16.msra.mxu0 %v276_v10  ;;  %264 = vmatpush1.bf16.msra.mxu1 %v276_v10 }
  0x14   :  { %150 = vmatprep.subr.bf16.mxu0 %v287_v0  ;;  %256 = vmatprep.subr.bf16.mxu1 %v287_v0 }
  0x17   :  { %151 = vmatpush1.bf16.msra.mxu0 %v277_v12  ;;  %265 = vmatpush1.bf16.msra.mxu1 %v277_v12 }
  0x18   :  { %152 = vmatprep.subr.bf16.mxu0 %v287_v0  ;;  %257 = vmatprep.subr.bf16.mxu1 %v287_v0 }
  0x1b   :  { %153 = vmatpush1.bf16.msra.mxu0 %v278_v13  ;;  %266 = vmatpush1.bf16.msra.mxu1 %v278_v13 }
  0x1c   :  { %154 = vmatprep.subr.bf16.mxu0 %v287_v0  ;;  %258 = vmatprep.subr.bf16.mxu1 %v287_v0 }
  0x1f   :  { %155 = vmatpush1.bf16.msra.mxu0 %v279_v14  ;;  %267 = vmatpush1.bf16.msra.mxu1 %v279_v14 }
  0x20   :  { %156 = vmatprep.subr.bf16.mxu0 %v287_v0  ;;  %259 = vmatprep.subr.bf16.mxu1 %v287_v0 }
  0x23   :  { %157 = vmatpush1.bf16.msra.mxu0 %v280_v15  ;;  %268 = vmatpush1.bf16.msra.mxu1 %v280_v15 }
  0x26   :  { %173 = vmatmul.mubr.bf16.vlgmr.msra.gmra.mrb[0].mxu0 %v281_v16  ;;  %181 = vmatmul.mubr.bf16.vlgmr.msra.gmra.mrb[0].mxu1 %v284_v17 }
  0x84   :  { %v54_v18 = vpop.permute.xlu1 %53 }
  0x85   :  { %v44_v19 = vpop.permute.xlu0 %43 }
  0x88   :  { %v59_v20 = vpop.permute.xlu1 %58 }
  0x89   :  { %v49_v21 = vpop.permute.xlu0 %48 }
  0xf9   :  { %v174_v22 = vpop.f32.mrb[0].mxu0  ;;  %v182_v23 = vpop.f32.mrb[0].mxu1 }
  0xfa   :  { %v175_v24 = vadd.f32 %v174_v22, %v44_v19  ;;  %v183_v25 = vadd.f32 %v182_v23, %v54_v18  ;;  %v176_v26 = vpop.f32.mrb[1].mxu0  ;;  %v184_v27 = vpop.f32.mrb[1].mxu1 }
  0xfb   :  { %v177_v28 = vpop.f32.mrb[2].mxu0  ;;  %v185_v29 = vpop.f32.mrb[2].mxu1 }
  0xfc   :  { %v178_v30 = vadd.f32 %v177_v28, %v49_v21  ;;  %v186_v31 = vadd.f32 %v185_v29, %v59_v20  ;;  %v179_v32 = vpop.f32.mrb[3].mxu0  ;;  %v187_v33 = vpop.f32.mrb[3].mxu1  ;;  %v189_v34 = vmax.f32 %v175_v24, 0.0  ;;  %v191_v35 = vmax.f32 %v183_v25, 0.0 }
  0xfe   :  { %v190_v36 = vmax.f32 %v178_v30, 0.0  ;;  %v192_v37 = vmax.f32 %v186_v31, 0.0 }
 0x100   :  { %v243_v38 = vpack.c.bf16 %v190_v36, %v189_v34  ;;  %v248_v39 = vpack.c.bf16 %v192_v37, %v191_v35 }
 0x102   :  { %244 = vst [vmem:[%s368_s3] sm:$0xff] %v243_v38   ;;  %250 = vst [vmem:[%s368_s3 + $0x8] sm:$0xff] %v248_v39  }

// kernel: fwd.7
= control target key start
LH: loop header
LB: loop body
LE: loop exit
PB: predicated region body
PF: predicated region fallthrough
CT: control target
= control target key end

     0   :  { %v577_v1 = vmov 0   ;;  %vm230_vm0 = vcmask 261120   ;;  %vm357_vm1 = vcmask 130048   ;;  %s732_s1 = inlined_call_operand.vmem [shape: bf16[288,128], index: 1, kind: input, shape index: {}]   ;;  %s733_s0 = inlined_call_operand.vmem [shape: bf16[32,288], index: 0, kind: input, shape index: {}]   ;;  %s734_s4 = inlined_call_operand.vmem [shape: bf16[16,128], index: 4, kind: input, shape index: {}]   ;;  %s735_s3 = inlined_call_operand.vmem [shape: bf16[32,16], index: 3, kind: input, shape index: {}]   ;;  %s736_s2 = inlined_call_operand.vmem [shape: f32[32,1], index: 2, kind: input, shape index: {}]   ;;  %s737_s5 = inlined_call_operand.vmem [shape: f32[32,1], index: 5, kind: input, shape index: {}]   ;;  %s738_s6 = inlined_call_operand.vmem [shape: f32[32,128], index: 6, kind: output, shape index: {}]  }
   0x1   :  { %v548_v0 = vld [vmem:[%s732_s1 + $0x40] sm:$0xff]   ;;  %547 = vset.pattern.permute.xlu1 %v577_v1  ;;  %546 = vset.pattern.permute.xlu0 %v577_v1  ;;  %v550_v3 = vld [vmem:[%s732_s1 + $0x48] sm:$0xff]   ;;  %v552_v5 = vld [vmem:[%s732_s1 + $0x50] sm:$0xff]  }
   0x2   :  { %v549_v2 = vld [vmem:[%s732_s1] sm:$0xff]   ;;  %488 = vmatprep.subr.bf16.mxu0 %v548_v0  ;;  %v551_v4 = vld [vmem:[%s732_s1 + $0x8] sm:$0xff]   ;;  %v553_v7 = vld [vmem:[%s732_s1 + $0x10] sm:$0xff]  }
   0x3   :  { %489 = vmatpush3.bf16.msra.mxu0 %v549_v2  ;;  %v554_v6 = vld [vmem:[%s732_s1 + $0x80] sm:$0xff]   ;;  %v555_v8 = vld [vmem:[%s732_s1 + $0x58] sm:$0xff]   ;;  %v557_v9 = vld [vmem:[%s732_s1 + $0x88] sm:$0xff]  }
   0x4   :  { %490 = vmatprep.subr.bf16.mxu0 %v550_v3  ;;  %523 = vmatprep.subr.bf16.mxu1 %v554_v6  ;;  %v556_v10 = vld [vmem:[%s732_s1 + $0x18] sm:$0xff]   ;;  %v559_v11 = vld [vmem:[%s733_s0 + $0x8] ss:$12 sps:$4 sm:$0xff]   ;;  %v558_v12 = vld [vmem:[%s732_s1 + $0x60] sm:$0xff]  }
   0x5   :  { %524 = vmatpush3.bf16.msra.mxu1 %v554_v6  ;;  %527 = vmatprep.mubr.msk.bf16.mxu1 %vm230_vm0, %v559_v11  ;;  %v561_v13 = vld [vmem:[%s733_s0 + $0x20] ss:$12 sps:$4 sm:$0xff]   ;;  %v564_v18 = vld [vmem:[%s732_s1 + $0x70] sm:$0xff]   ;;  %v567_v21 = vld [vmem:[%s732_s1 + $0x78] sm:$0xff]  }
   0x6   :  { %525 = vmatprep.subr.bf16.mxu1 %v557_v9  ;;  %v560_v14 = vld [vmem:[%s732_s1 + $0x20] sm:$0xff]   ;;  %v562_v15 = vld [vmem:[%s732_s1 + $0x68] sm:$0xff]   ;;  %v565_v20 = vld [vmem:[%s732_s1 + $0x30] sm:$0xff]  }
   0x7   :  { %491 = vmatpush3.bf16.msra.mxu0 %v551_v4  ;;  %v563_v16 = vld [vmem:[%s732_s1 + $0x28] sm:$0xff]   ;;  %v566_v17 = vld [vmem:[%s734_s4] sm:$0xff]   ;;  %v70_v24 = vld [vmem:[%s736_s2 + $0x10] sm:$0xff] }
   0x8   :  { %492 = vmatprep.subr.bf16.mxu0 %v552_v5  ;;  %v568_v19 = vld [vmem:[%s735_s3] sm:$0xff]   ;;  %v570_v22 = vld [vmem:[%s735_s3 + $0x8] sm:$0xff]   ;;  %84 = vperm.xlu1 %547, %v70_v24   ;;  %v569_v26 = vld [vmem:[%s732_s1 + $0x38] sm:$0xff]  }
   0x9   :  { %526 = vmatpush3.bf16.msra.mxu1 %v557_v9  ;;  %v573_v23 = vld [vmem:[%s733_s0 + $0x4] ss:$12 sps:$4 sm:$0xff]   ;;  %v71_v27 = vld [vmem:[%s736_s2 + $0x18] sm:$0xff]  ;;  %v69_v28 = vld [vmem:[%s736_s2 + $0x8] sm:$0xff] }
   0xa   :  { %531 = vmatprep.subr.bf16.mxu1 %v566_v17  ;;  %269 = vmatprep.mubr.bf16.mxu0 %v573_v23  ;;  %v68_v25 = vld [vmem:[%s736_s2] sm:$0xff]  ;;  %v574_v30 = vld [vmem:[%s733_s0 + $0x1c] ss:$12 sps:$4 sm:$0xff]   ;;  %v419_v34 = vld [vmem:[%s737_s5 + $0x10] sm:$0xff] }
   0xb   :  { %493 = vmatpush3.bf16.msra.mxu0 %v553_v7  ;;  %74 = vperm.xlu0 %546, %v68_v25   ;;  %v571_v29 = vld [vmem:[%s733_s0] ss:$12 sps:$4 sm:$0xff]   ;;  %v420_v33 = vld [vmem:[%s737_s5 + $0x18] sm:$0xff] }
   0xc   :  { %494 = vmatprep.subr.bf16.mxu0 %v555_v8  ;;  %528 = vmatmul.mubr.msk.bf16.vlgmr.msra.gmra.mrb[0].mxu1 %vm230_vm0, %v561_v13  ;;  %v418_v31 = vld [vmem:[%s737_s5 + $0x8] sm:$0xff]  ;;  %v417_v32 = vld [vmem:[%s737_s5] sm:$0xff] }
   0xd   :  { %532 = vmatpush3.bf16.msra.mxu1 %v566_v17  ;;  %533 = vmatprep.mubr.msk.bf16.mxu1 %vm357_vm1, %v568_v19  ;;  %v576_v35 = vld [vmem:[%s733_s0 + $0x18] ss:$12 sps:$4 sm:$0xff]  }
   0xe   :  { %89 = vperm.xlu1 %547, %v71_v27  }
   0xf   :  { %495 = vmatpush3.bf16.msra.mxu0 %v556_v10  ;;  %79 = vperm.xlu0 %546, %v69_v28  }
  0x10   :  { %496 = vmatprep.subr.bf16.mxu0 %v558_v12 }
  0x12   :  { %428 = vperm.xlu1 %547, %v418_v31  }
  0x13   :  { %497 = vmatpush3.bf16.msra.mxu0 %v560_v14  ;;  %423 = vperm.xlu0 %546, %v417_v32  }
  0x14   :  { %498 = vmatprep.subr.bf16.mxu0 %v562_v15 }
  0x16   :  { %438 = vperm.xlu1 %547, %v420_v33  }
  0x17   :  { %499 = vmatpush3.bf16.msra.mxu0 %v563_v16  ;;  %433 = vperm.xlu0 %546, %v419_v34  }
  0x18   :  { %500 = vmatprep.subr.bf16.mxu0 %v564_v18  ;;  %534 = vmatmul.mubr.msk.bf16.vlgmr.msra.gmra.mrb[0].mxu1 %vm357_vm1, %v570_v22 }
  0x1b   :  { %501 = vmatpush3.bf16.msra.mxu0 %v565_v20 }
  0x1c   :  { %502 = vmatprep.subr.bf16.mxu0 %v567_v21 }
  0x1f   :  { %503 = vmatpush3.bf16.msra.mxu0 %v569_v26 }
  0x22   :  { %270 = vmatmul.mubr.bf16.vlgmr.msra.gmra.mrb[0].mxu0 %v571_v29 }
  0x23   :  { %277 = vmatprep.mubr.bf16.mxu0 %v574_v30 }
  0x2a   :  { %278 = vmatmul.mubr.bf16.gmra.mrb[4].mxu0 %v576_v35 }
  0x87   :  { %v85_v40 = vpop.permute.xlu1 %84 }
  0x8a   :  { %v75_v37 = vpop.permute.xlu0 %74 }
  0x8d   :  { %v90_v47 = vpop.permute.xlu1 %89 }
  0x8e   :  { %v80_v43 = vpop.permute.xlu0 %79 }
  0x91   :  { %v429_v57 = vpop.permute.xlu1 %428 }
  0x92   :  { %v424_v53 = vpop.permute.xlu0 %423 }
  0x95   :  { %v439_v8 = vpop.permute.xlu1 %438 }
  0x96   :  { %v434_v5 = vpop.permute.xlu0 %433 }
  0xeb   :  { %v535_v36 = vpop.f32.mrb[0].mxu1 }
  0xec   :  { %v398_v38 = vpop.f32.mrb[1].mxu1 }
  0xed   :  { %v536_v39 = vpop.f32.mrb[2].mxu1 }
  0xee   :  { %v401_v41 = vpop.f32.mrb[3].mxu1 }
  0xf5   :  { %v504_v42 = vpop.f32.mrb[0].mxu0 }
  0xf6   :  { %v505_v44 = vpop.f32.mrb[1].mxu0 }
  0xf7   :  { %v506_v45 = vadd.f32 %v505_v44, %v504_v42  ;;  %v507_v46 = vpop.f32.mrb[2].mxu0 }
  0xf8   :  { %v508_v48 = vpop.f32.mrb[3].mxu0 }
  0xf9   :  { %v272_v49 = vadd.f32 %v506_v45, %v75_v37  ;;  %v509_v50 = vadd.f32 %v508_v48, %v507_v46 }
  0xfb   :  { %v538_v51 = vadd.f32 %v398_v38, %v272_v49  ;;  %v275_v52 = vadd.f32 %v509_v50, %v80_v43 }
  0xfd   :  { %v441_v54 = vadd.f32 %v538_v51, %v424_v53  ;;  %v540_v55 = vadd.f32 %v401_v41, %v275_v52  ;;  %v510_v56 = vpop.f32.mrb[4].mxu0 }
  0xfe   :  { %v511_v58 = vpop.f32.mrb[5].mxu0 }
  0xff   :  { %v445_v59 = vmax.f32 %v441_v54, 0.0  ;;  %v442_v60 = vadd.f32 %v540_v55, %v429_v57  ;;  %v512_v61 = vadd.f32 %v511_v58, %v510_v56  ;;  %v513_v62 = vpop.f32.mrb[6].mxu0 }
 0x100   :  { %v514_v63 = vpop.f32.mrb[7].mxu0 }
 0x101   :  { %449 = vst [vmem:[%s738_s6] sm:$0xff] %v445_v59  ;;  %v446_v0 = vmax.f32 %v442_v60, 0.0  ;;  %v280_v1 = vadd.f32 %v512_v61, %v85_v40  ;;  %v515_v2 = vadd.f32 %v514_v63, %v513_v62 }
 0x103   :  { %450 = vst [vmem:[%s738_s6 + $0x8] sm:$0xff] %v446_v0  ;;  %v537_v3 = vadd.f32 %v535_v36, %v280_v1  ;;  %v283_v4 = vadd.f32 %v515_v2, %v90_v47 }
 0x105   :  { %v443_v6 = vadd.f32 %v537_v3, %v434_v5  ;;  %v539_v7 = vadd.f32 %v536_v39, %v283_v4 }
 0x107   :  { %v447_v9 = vmax.f32 %v443_v6, 0.0  ;;  %v444_v10 = vadd.f32 %v539_v7, %v439_v8 }
 0x109   :  { %451 = vst [vmem:[%s738_s6 + $0x10] sm:$0xff] %v447_v9  ;;  %v448_v11 = vmax.f32 %v444_v10, 0.0 }
 0x10b   :  { %452 = vst [vmem:[%s738_s6 + $0x18] sm:$0xff] %v448_v11 }

</bundles_post_ra>
